<compile_context>
chip_gen: v7x
topology: tpu7x:2x2x1
jax: 0.10.0
libtpu: 0.0.40
codegen_flags: <defaults>
</compile_context>

<pallas_src>
import functools

import jax
import jax.numpy as jnp
from jax.experimental import pallas as pl
from jax.experimental.pallas import tpu as pltpu


def _round_up(x, m):
    return (x + m - 1) // m * m


def _num_tensorcores_per_chip():
    """2 TensorCores per chip only on v7x; v5e/v6e have a single TC."""
    try:
        kind = jax.devices()[0].device_kind.lower()
    except Exception:
        return 1
    return 2 if "v7" in kind else 1


def _tcn_fused_kernel(x_ref, w_ref, b_ref, mask_ref, o_ref,
                      act_a, act_b, col_ref, *,
                      num_layers, kernel_size, halo, chunk, n_chunks, cin_p, cp):
    """Fused [Conv1d -> ReLU -> Dropout(identity)] * num_layers on one folded tile.

    x_ref   : (cin_p, Tx)  folded input tile (compute dtype); interior at lane `halo`,
                           per-batch 'same' zero halos embedded; leading-halo and
                           trailing lanes are already zero (padded in HBM).
    w_ref   : (num_layers, cp, K*max(cin_p,cp))  im2col-stacked weights (VMEM resident).
    b_ref   : (num_layers, cp, 1)  f32 biases (resident).
    mask_ref: (1, T)       1.0 at valid output lanes, 0.0 at halo / pad lanes.
    o_ref   : (cp, T)      f32 output tile.
    act_a/b : (cp, Tx)     ping-pong activation scratch (compute dtype).
    col_ref : (K*max(cin_p,cp), chunk)  im2col slab scratch for one lane chunk.
    """
    K = kernel_size
    p = K // 2
    T = o_ref.shape[-1]
    Tx = act_a.shape[-1]
    tail = Tx - halo - T
    acts = (act_a, act_b)

    # Only the halo / tail columns of the used activation scratches need zeros;
    # the interior is fully overwritten by each layer's masked store.  Runs every
    # grid step so each TensorCore's private scratch is initialised (megacore).
    n_dst = min(num_layers - 1, 2)
    for i in range(n_dst):
        if halo > 0:
            acts[i][:, :halo] = jnp.zeros((cp, halo), acts[i].dtype)
        if tail > 0:
            acts[i][:, halo + T:halo + T + tail] = jnp.zeros((cp, tail), acts[i].dtype)

    for l in range(num_layers):                         # static unroll over layers
        src = x_ref if l == 0 else acts[(l - 1) % 2]
        src_c = cin_p if l == 0 else cp
        kc = K * src_c
        w_l = w_ref[l][:, :kc]                          # (cp, kc), compute dtype
        b_l = b_ref[l]                                  # (cp, 1), f32
        is_last = (l == num_layers - 1)
        dst = None if is_last else acts[l % 2]

        # Lane-chunked compute: acc stays (cp, chunk) (<= ~16 vregs); the shared
        # col_ref scratch serialises chunks, so the static unroll does not blow
        # up vreg pressure, while all slice offsets stay static/lane-aligned.
        for c in range(n_chunks):
            off = c * chunk
            # im2col: stack the K shifted windows -> one MXU dot of depth kc.
            for k in range(K):
                col_ref[k * src_c:(k + 1) * src_c, :] = \
                    src[:, halo - p + k + off: halo - p + k + off + chunk]
            acc = jnp.dot(w_l, col_ref[:kc, :], preferred_element_type=jnp.float32)
            y = jnp.maximum(acc + b_l, 0.0)
            # Re-zero per-segment halo / padding lanes so the next layer sees
            # correct zero 'same' padding.  Dropout(0.2) is identity (eval mode).
            # TODO(synk): training-mode stochastic Dropout(0.2) not implemented.
            y = y * mask_ref[:, off:off + chunk]
            if is_last:
                o_ref[:, off:off + chunk] = y.astype(o_ref.dtype)
            else:
                dst[:, halo + off:halo + off + chunk] = y.astype(dst.dtype)


def tcn_forward_pallas(x, params, *, compute_dtype=jnp.bfloat16, lane_target=4096,
                       chunk_lanes=512):
    """x: (N, C_in, L); params: [(w (C_out,C_in_l,K), b (C_out,))]*L -> (N, C_out, L)."""
    N, C_in, L = x.shape
    num_layers = len(params)
    assert num_layers >= 1
    C_out, _, K = params[0][0].shape
    # TODO(synk): even kernel_size (PyTorch padding=K//2 changes output length) unsupported.
    assert K % 2 == 1, "kernel_size must be odd to match PyTorch padding=K//2 semantics"
    p = K // 2
    Lp = L + 2 * p                                      # per-batch segment incl. halo

    cin_p = _round_up(C_in, 16)                         # 16-sublane aligned (bf16 packing)
    cp = _round_up(C_out, 16)
    kcm = K * max(cin_p, cp)

    # ---- im2col-stacked, zero-padded weights & biases (tiny; VMEM resident) -----
    w_all = jnp.zeros((num_layers, cp, kcm), compute_dtype)
    b_all = jnp.zeros((num_layers, cp, 1), jnp.float32)
    for l, (w, b) in enumerate(params):
        co, ci, _ = w.shape
        stride = cin_p if l == 0 else cp
        for k in range(K):
            w_all = w_all.at[l, :co, k * stride:k * stride + ci].set(
                w[:, :, k].astype(compute_dtype))
        b_all = b_all.at[l, :co, 0].set(b.astype(jnp.float32))

    # ---- fold batch into lanes: NB batch segments per lane-dense grid tile ------
    NB = max(1, min(N, lane_target // Lp))
    if _num_tensorcores_per_chip() >= 2 and N >= 2 and -(-N // NB) < 2:
        NB = -(-N // 2)                                 # v7x only: give both TCs a tile
    n_tiles = -(-N // NB)
    Np = n_tiles * NB

    interior = NB * Lp
    T0 = _round_up(interior, 128)
    chunk = min(_round_up(chunk_lanes, 128), T0)
    T = _round_up(T0, chunk)                            # multiple of chunk (and of 128)
    n_chunks = T // chunk
    halo = 128 if p > 0 else 0                          # keep interior lane-aligned
    tail = 128 if p > 0 else 0
    Tx = halo + T + tail

    # ---- fold + cast + halo-pad in one wrapper pass ------------------------------
    x_pad = jnp.pad(x.astype(compute_dtype),
                    ((0, Np - N), (0, cin_p - C_in), (p, p)))         # (Np, cin_p, Lp)
    x_fold = (x_pad.reshape(n_tiles, NB, cin_p, Lp)
              .transpose(0, 2, 1, 3)
              .reshape(n_tiles, cin_p, interior))
    x_fold = jnp.pad(x_fold, ((0, 0), (0, 0), (halo, Tx - halo - interior)))
    # TODO(synk): the fold/unfold are extra XLA HBM passes; emitting per-segment
    # blocks directly via the grid/BlockSpec would remove them.

    # ---- validity mask over folded lanes (halo / lane-pad / batch-pad -> 0) ------
    pos = jnp.arange(T)
    seg = pos // Lp
    off = pos % Lp
    tile_ids = jnp.arange(n_tiles)[:, None]
    valid = (off >= p) & (off < p + L) & (seg < NB) & (tile_ids * NB + seg < N)
    mask = valid.astype(jnp.float32).reshape(n_tiles, 1, T)

    kernel = functools.partial(
        _tcn_fused_kernel, num_layers=num_layers, kernel_size=K, halo=halo,
        chunk=chunk, n_chunks=n_chunks, cin_p=cin_p, cp=cp)

    out_fold = pl.pallas_call(
        kernel,
        out_shape=jax.ShapeDtypeStruct((n_tiles, cp, T), jnp.float32),
        grid=(n_tiles,),
        in_specs=[
            pl.BlockSpec((None, cin_p, Tx), lambda t: (t, 0, 0)),         # input tile
            pl.BlockSpec((num_layers, cp, kcm), lambda t: (0, 0, 0)),     # weights (resident)
            pl.BlockSpec((num_layers, cp, 1), lambda t: (0, 0, 0)),       # biases (resident)
            pl.BlockSpec((None, 1, T), lambda t: (t, 0, 0)),              # validity mask
        ],
        out_specs=pl.BlockSpec((None, cp, T), lambda t: (t, 0, 0)),
        scratch_shapes=[
            pltpu.VMEM((cp, Tx), compute_dtype),                          # act ping
            pltpu.VMEM((cp, Tx), compute_dtype),                          # act pong
            pltpu.VMEM((K * max(cin_p, cp), chunk), compute_dtype),       # im2col slab
        ],
        compiler_params=pltpu.CompilerParams(
            dimension_semantics=("parallel",),
            vmem_limit_bytes=32 * 1024 * 1024),
    )(x_fold, w_all, b_all, mask)

    # ---- unfold back to (N, C_out, L) --------------------------------------------
    out = out_fold[:, :, :interior].reshape(n_tiles, cp, NB, Lp)
    out = out.transpose(0, 2, 1, 3).reshape(Np, cp, Lp)
    return out[:N, :C_out, p:p + L]


@functools.partial(jax.jit, static_argnames=("compute_dtype", "lane_target"))
def tcn_forward(x, params, compute_dtype=jnp.bfloat16, lane_target=4096):
    return tcn_forward_pallas(x, params, compute_dtype=compute_dtype,
                              lane_target=lane_target)


def init_tcn_params(key, input_channels, output_channels, kernel_size=3, num_layers=3):
    """Deterministic PyTorch-style (uniform +/- 1/sqrt(fan_in)) Conv1d init."""
    params = []
    for i in range(num_layers):
        in_ch = input_channels if i == 0 else output_channels
        key, kw, kb = jax.random.split(key, 3)
        bound = 1.0 / jnp.sqrt(in_ch * kernel_size)
        w = jax.random.uniform(kw, (output_channels, in_ch, kernel_size),
                               jnp.float32, -bound, bound)
        b = jax.random.uniform(kb, (output_channels,), jnp.float32, -bound, bound)
        params.append((w, b))
    return params


def tcn_reference(x, params):
    """Pure-JAX reference of the PyTorch forward (eval mode)."""
    for w, b in params:
        pad = w.shape[2] // 2
        x = jax.lax.conv_general_dilated(
            x, w, window_strides=(1,), padding=[(pad, pad)],
            dimension_numbers=("NCH", "OIH", "NCH"))
        x = x + b[None, :, None]
        x = jnp.maximum(x, 0.0)
    return x


if __name__ == "__main__":
    key = jax.random.PRNGKey(0)
    k_x, k_p, k_x2 = jax.random.split(key, 3)

    batch, input_channels, output_channels, seq_len = 2, 4, 32, 16
    kernel_size, num_layers = 3, 3

    x = jax.random.normal(k_x, (batch, input_channels, seq_len), jnp.float32)
    params = tuple(init_tcn_params(k_p, input_channels, output_channels,
                                   kernel_size=kernel_size, num_layers=num_layers))
    ref = jax.block_until_ready(tcn_reference(x, params))

    # Primary (performance) path: bf16 MXU operands/activations, f32 accumulation.
    out = jax.block_until_ready(tcn_forward(x, params))
    # Exactness path: full f32 compute (same kernel, compute_dtype=f32).
    out_f32 = jax.block_until_ready(tcn_forward(x, params, compute_dtype=jnp.float32))

    assert out.shape == (batch, output_channels, seq_len), out.shape
    assert jnp.allclose(out_f32, ref, atol=1e-4, rtol=1e-4), \
        float(jnp.max(jnp.abs(out_f32 - ref)))
    assert jnp.allclose(out, ref, atol=5e-2, rtol=5e-2), \
        float(jnp.max(jnp.abs(out - ref)))

    # Larger case: exercises lane chunking (n_chunks > 1) and multi-tile grids.
    x2 = jax.random.normal(k_x2, (8, input_channels, 100), jnp.float32)
    ref2 = jax.block_until_ready(tcn_reference(x2, params))
    out2_f32 = jax.block_until_ready(tcn_forward(x2, params, compute_dtype=jnp.float32))
    out2_bf16 = jax.block_until_ready(tcn_forward(x2, params))
    out2_tiled = jax.block_until_ready(
        tcn_forward(x2, params, compute_dtype=jnp.float32, lane_target=256))
    assert jnp.allclose(out2_f32, ref2, atol=1e-4, rtol=1e-4), \
        float(jnp.max(jnp.abs(out2_f32 - ref2)))
    assert jnp.allclose(out2_tiled, ref2, atol=1e-4, rtol=1e-4), \
        float(jnp.max(jnp.abs(out2_tiled - ref2)))
    assert jnp.allclose(out2_bf16, ref2, atol=5e-2, rtol=5e-2), \
        float(jnp.max(jnp.abs(out2_bf16 - ref2)))

    print("KERNEL_OK")
</pallas_src>

<mosaic_0001>
module attributes {stable_mosaic.version = 11 : i64} {
  func.func @_tcn_fused_kernel(%arg0: i32, %arg1: memref<1x16x384xbf16, #tpu.memory_space<vmem>>, %arg2: memref<3x32x96xbf16, #tpu.memory_space<vmem>>, %arg3: memref<3x32x1xf32, #tpu.memory_space<vmem>>, %arg4: memref<1x1x128xf32, #tpu.memory_space<vmem>>, %arg5: memref<1x32x128xf32, #tpu.memory_space<vmem>>, %arg6: memref<32x384xbf16, #tpu.memory_space<vmem>>, %arg7: memref<32x384xbf16, #tpu.memory_space<vmem>>, %arg8: memref<96x128xbf16, #tpu.memory_space<vmem>>) attributes {dimension_semantics = [#tpu.dimension_semantics<parallel>], iteration_bounds = array<i64: 1>, scalar_prefetch = 0 : i64, scratch_operands = 3 : i64, tpu.core_type = #tpu.core_type<tc>, window_params = [{transform_indices = @transform_0, window_bounds = array<i64: 1, 16, 384>}, {pipeline_mode = #tpu.pipeline_mode<synchronous>, transform_indices = @transform_1, window_bounds = array<i64: 3, 32, 96>}, {pipeline_mode = #tpu.pipeline_mode<synchronous>, transform_indices = @transform_2, window_bounds = array<i64: 3, 32, 1>}, {transform_indices = @transform_3, window_bounds = array<i64: 1, 1, 128>}, {transform_indices = @transform_4, window_bounds = array<i64: 1, 32, 128>}]} {
    %cst = arith.constant 0.000000e+00 : bf16
    %0 = vector.broadcast %cst : bf16 to vector<32x128xbf16>
    %c0 = arith.constant 0 : index
    %c0_0 = arith.constant 0 : index
    %1 = vector.load %arg6[%c0, %c0_0] : memref<32x384xbf16, #tpu.memory_space<vmem>>, vector<32x128xbf16>
    tpu.vector_store %arg6[%c0, %c0_0], %0 {strides = array<i32>} : memref<32x384xbf16, #tpu.memory_space<vmem>>, vector<32x128xbf16>,
    %cst_1 = arith.constant 0.000000e+00 : bf16
    %2 = vector.broadcast %cst_1 : bf16 to vector<32x128xbf16>
    %c0_2 = arith.constant 0 : index
    %c256 = arith.constant 256 : index
    %3 = vector.load %arg6[%c0_2, %c256] : memref<32x384xbf16, #tpu.memory_space<vmem>>, vector<32x128xbf16>
    tpu.vector_store %arg6[%c0_2, %c256], %2 {strides = array<i32>} : memref<32x384xbf16, #tpu.memory_space<vmem>>, vector<32x128xbf16>,
    %cst_3 = arith.constant 0.000000e+00 : bf16
    %4 = vector.broadcast %cst_3 : bf16 to vector<32x128xbf16>
    %c0_4 = arith.constant 0 : index
    %c0_5 = arith.constant 0 : index
    %5 = vector.load %arg7[%c0_4, %c0_5] : memref<32x384xbf16, #tpu.memory_space<vmem>>, vector<32x128xbf16>
    tpu.vector_store %arg7[%c0_4, %c0_5], %4 {strides = array<i32>} : memref<32x384xbf16, #tpu.memory_space<vmem>>, vector<32x128xbf16>,
    %cst_6 = arith.constant 0.000000e+00 : bf16
    %6 = vector.broadcast %cst_6 : bf16 to vector<32x128xbf16>
    %c0_7 = arith.constant 0 : index
    %c256_8 = arith.constant 256 : index
    %7 = vector.load %arg7[%c0_7, %c256_8] : memref<32x384xbf16, #tpu.memory_space<vmem>>, vector<32x128xbf16>
    tpu.vector_store %arg7[%c0_7, %c256_8], %6 {strides = array<i32>} : memref<32x384xbf16, #tpu.memory_space<vmem>>, vector<32x128xbf16>,
    %c0_9 = arith.constant 0 : index
    %c0_10 = arith.constant 0 : index
    %c0_11 = arith.constant 0 : index
    %8 = vector.load %arg2[%c0_9, %c0_10, %c0_11] : memref<3x32x96xbf16, #tpu.memory_space<vmem>>, vector<1x32x96xbf16>
    %9 = vector.shape_cast %8 : vector<1x32x96xbf16> to vector<32x96xbf16>
    %10 = vector.extract_strided_slice %9 {offsets = [0, 0], sizes = [32, 48], strides = [1, 1]} : vector<32x96xbf16> to vector<32x48xbf16>
    %c0_12 = arith.constant 0 : index
    %c0_13 = arith.constant 0 : index
    %c0_14 = arith.constant 0 : index
    %11 = vector.load %arg3[%c0_12, %c0_13, %c0_14] : memref<3x32x1xf32, #tpu.memory_space<vmem>>, vector<1x32x1xf32>
    %12 = vector.shape_cast %11 : vector<1x32x1xf32> to vector<32x1xf32>
    %c0_15 = arith.constant 0 : index
    %c0_16 = arith.constant 0 : index
    %c127 = arith.constant 127 : index
    %13 = vector.load %arg1[%c0_15, %c0_16, %c127] : memref<1x16x384xbf16, #tpu.memory_space<vmem>>, vector<1x16x128xbf16>
    %14 = vector.shape_cast %13 : vector<1x16x128xbf16> to vector<16x128xbf16>
    %c0_17 = arith.constant 0 : index
    %c0_18 = arith.constant 0 : index
    %15 = vector.load %arg8[%c0_17, %c0_18] : memref<96x128xbf16, #tpu.memory_space<vmem>>, vector<16x128xbf16>
    tpu.vector_store %arg8[%c0_17, %c0_18], %14 {strides = array<i32>} : memref<96x128xbf16, #tpu.memory_space<vmem>>, vector<16x128xbf16>,
    %c0_19 = arith.constant 0 : index
    %c0_20 = arith.constant 0 : index
    %c128 = arith.constant 128 : index
    %16 = vector.load %arg1[%c0_19, %c0_20, %c128] : memref<1x16x384xbf16, #tpu.memory_space<vmem>>, vector<1x16x128xbf16>
    %17 = vector.shape_cast %16 : vector<1x16x128xbf16> to vector<16x128xbf16>
    %c16 = arith.constant 16 : index
    %c0_21 = arith.constant 0 : index
    %18 = vector.load %arg8[%c16, %c0_21] : memref<96x128xbf16, #tpu.memory_space<vmem>>, vector<16x128xbf16>
    tpu.vector_store %arg8[%c16, %c0_21], %17 {strides = array<i32>} : memref<96x128xbf16, #tpu.memory_space<vmem>>, vector<16x128xbf16>,
    %c0_22 = arith.constant 0 : index
    %c0_23 = arith.constant 0 : index
    %c129 = arith.constant 129 : index
    %19 = vector.load %arg1[%c0_22, %c0_23, %c129] : memref<1x16x384xbf16, #tpu.memory_space<vmem>>, vector<1x16x128xbf16>
    %20 = vector.shape_cast %19 : vector<1x16x128xbf16> to vector<16x128xbf16>
    %c32 = arith.constant 32 : index
    %c0_24 = arith.constant 0 : index
    %21 = vector.load %arg8[%c32, %c0_24] : memref<96x128xbf16, #tpu.memory_space<vmem>>, vector<16x128xbf16>
    tpu.vector_store %arg8[%c32, %c0_24], %20 {strides = array<i32>} : memref<96x128xbf16, #tpu.memory_space<vmem>>, vector<16x128xbf16>,
    %c0_25 = arith.constant 0 : index
    %c0_26 = arith.constant 0 : index
    %22 = vector.load %arg8[%c0_25, %c0_26] : memref<96x128xbf16, #tpu.memory_space<vmem>>, vector<48x128xbf16>
    %cst_27 = arith.constant dense<0.000000e+00> : vector<32x128xf32>
    %23 = tpu.matmul %10, %22, %cst_27 {dimension_numbers = #tpu.dot_dimension_numbers<[1], [0], [0], [1], [0, 0, 1, 1], [], []>} : vector<32x48xbf16>, vector<48x128xbf16>, vector<32x128xf32> -> vector<32x128xf32>
    %24 = vector.broadcast %12 : vector<32x1xf32> to vector<32x128xf32>
    %25 = arith.addf %23, %24 : vector<32x128xf32>
    %cst_28 = arith.constant 0.000000e+00 : f32
    %26 = vector.broadcast %cst_28 : f32 to vector<32x128xf32>
    %27 = arith.maximumf %25, %26 : vector<32x128xf32>
    %c0_29 = arith.constant 0 : index
    %c0_30 = arith.constant 0 : index
    %c0_31 = arith.constant 0 : index
    %28 = vector.load %arg4[%c0_29, %c0_30, %c0_31] : memref<1x1x128xf32, #tpu.memory_space<vmem>>, vector<1x1x128xf32>
    %29 = vector.shape_cast %28 : vector<1x1x128xf32> to vector<1x128xf32>
    %30 = vector.broadcast %29 : vector<1x128xf32> to vector<32x128xf32>
    %31 = arith.mulf %27, %30 : vector<32x128xf32>
    %32 = arith.truncf %31 : vector<32x128xf32> to vector<32x128xbf16>
    %c0_32 = arith.constant 0 : index
    %c128_33 = arith.constant 128 : index
    %33 = vector.load %arg6[%c0_32, %c128_33] : memref<32x384xbf16, #tpu.memory_space<vmem>>, vector<32x128xbf16>
    tpu.vector_store %arg6[%c0_32, %c128_33], %32 {strides = array<i32>} : memref<32x384xbf16, #tpu.memory_space<vmem>>, vector<32x128xbf16>,
    %c1 = arith.constant 1 : index
    %c0_34 = arith.constant 0 : index
    %c0_35 = arith.constant 0 : index
    %34 = vector.load %arg2[%c1, %c0_34, %c0_35] : memref<3x32x96xbf16, #tpu.memory_space<vmem>>, vector<1x32x96xbf16>
    %35 = vector.shape_cast %34 : vector<1x32x96xbf16> to vector<32x96xbf16>
    %c1_36 = arith.constant 1 : index
    %c0_37 = arith.constant 0 : index
    %c0_38 = arith.constant 0 : index
    %36 = vector.load %arg3[%c1_36, %c0_37, %c0_38] : memref<3x32x1xf32, #tpu.memory_space<vmem>>, vector<1x32x1xf32>
    %37 = vector.shape_cast %36 : vector<1x32x1xf32> to vector<32x1xf32>
    %c0_39 = arith.constant 0 : index
    %c127_40 = arith.constant 127 : index
    %38 = vector.load %arg6[%c0_39, %c127_40] : memref<32x384xbf16, #tpu.memory_space<vmem>>, vector<32x128xbf16>
    %c0_41 = arith.constant 0 : index
    %c0_42 = arith.constant 0 : index
    %39 = vector.load %arg8[%c0_41, %c0_42] : memref<96x128xbf16, #tpu.memory_space<vmem>>, vector<32x128xbf16>
    tpu.vector_store %arg8[%c0_41, %c0_42], %38 {strides = array<i32>} : memref<96x128xbf16, #tpu.memory_space<vmem>>, vector<32x128xbf16>,
    %c0_43 = arith.constant 0 : index
    %c128_44 = arith.constant 128 : index
    %40 = vector.load %arg6[%c0_43, %c128_44] : memref<32x384xbf16, #tpu.memory_space<vmem>>, vector<32x128xbf16>
    %c32_45 = arith.constant 32 : index
    %c0_46 = arith.constant 0 : index
    %41 = vector.load %arg8[%c32_45, %c0_46] : memref<96x128xbf16, #tpu.memory_space<vmem>>, vector<32x128xbf16>
    tpu.vector_store %arg8[%c32_45, %c0_46], %40 {strides = array<i32>} : memref<96x128xbf16, #tpu.memory_space<vmem>>, vector<32x128xbf16>,
    %c0_47 = arith.constant 0 : index
    %c129_48 = arith.constant 129 : index
    %42 = vector.load %arg6[%c0_47, %c129_48] : memref<32x384xbf16, #tpu.memory_space<vmem>>, vector<32x128xbf16>
    %c64 = arith.constant 64 : index
    %c0_49 = arith.constant 0 : index
    %43 = vector.load %arg8[%c64, %c0_49] : memref<96x128xbf16, #tpu.memory_space<vmem>>, vector<32x128xbf16>
    tpu.vector_store %arg8[%c64, %c0_49], %42 {strides = array<i32>} : memref<96x128xbf16, #tpu.memory_space<vmem>>, vector<32x128xbf16>,
    %c0_50 = arith.constant 0 : index
    %c0_51 = arith.constant 0 : index
    %44 = vector.load %arg8[%c0_50, %c0_51] : memref<96x128xbf16, #tpu.memory_space<vmem>>, vector<96x128xbf16>
    %cst_52 = arith.constant dense<0.000000e+00> : vector<32x128xf32>
    %45 = tpu.matmul %35, %44, %cst_52 {dimension_numbers = #tpu.dot_dimension_numbers<[1], [0], [0], [1], [0, 0, 1, 1], [], []>} : vector<32x96xbf16>, vector<96x128xbf16>, vector<32x128xf32> -> vector<32x128xf32>
    %46 = vector.broadcast %37 : vector<32x1xf32> to vector<32x128xf32>
    %47 = arith.addf %45, %46 : vector<32x128xf32>
    %cst_53 = arith.constant 0.000000e+00 : f32
    %48 = vector.broadcast %cst_53 : f32 to vector<32x128xf32>
    %49 = arith.maximumf %47, %48 : vector<32x128xf32>
    %c0_54 = arith.constant 0 : index
    %c0_55 = arith.constant 0 : index
    %c0_56 = arith.constant 0 : index
    %50 = vector.load %arg4[%c0_54, %c0_55, %c0_56] : memref<1x1x128xf32, #tpu.memory_space<vmem>>, vector<1x1x128xf32>
    %51 = vector.shape_cast %50 : vector<1x1x128xf32> to vector<1x128xf32>
    %52 = vector.broadcast %51 : vector<1x128xf32> to vector<32x128xf32>
    %53 = arith.mulf %49, %52 : vector<32x128xf32>
    %54 = arith.truncf %53 : vector<32x128xf32> to vector<32x128xbf16>
    %c0_57 = arith.constant 0 : index
    %c128_58 = arith.constant 128 : index
    %55 = vector.load %arg7[%c0_57, %c128_58] : memref<32x384xbf16, #tpu.memory_space<vmem>>, vector<32x128xbf16>
    tpu.vector_store %arg7[%c0_57, %c128_58], %54 {strides = array<i32>} : memref<32x384xbf16, #tpu.memory_space<vmem>>, vector<32x128xbf16>,
    %c2 = arith.constant 2 : index
    %c0_59 = arith.constant 0 : index
    %c0_60 = arith.constant 0 : index
    %56 = vector.load %arg2[%c2, %c0_59, %c0_60] : memref<3x32x96xbf16, #tpu.memory_space<vmem>>, vector<1x32x96xbf16>
    %57 = vector.shape_cast %56 : vector<1x32x96xbf16> to vector<32x96xbf16>
    %c2_61 = arith.constant 2 : index
    %c0_62 = arith.constant 0 : index
    %c0_63 = arith.constant 0 : index
    %58 = vector.load %arg3[%c2_61, %c0_62, %c0_63] : memref<3x32x1xf32, #tpu.memory_space<vmem>>, vector<1x32x1xf32>
    %59 = vector.shape_cast %58 : vector<1x32x1xf32> to vector<32x1xf32>
    %c0_64 = arith.constant 0 : index
    %c127_65 = arith.constant 127 : index
    %60 = vector.load %arg7[%c0_64, %c127_65] : memref<32x384xbf16, #tpu.memory_space<vmem>>, vector<32x128xbf16>
    %c0_66 = arith.constant 0 : index
    %c0_67 = arith.constant 0 : index
    %61 = vector.load %arg8[%c0_66, %c0_67] : memref<96x128xbf16, #tpu.memory_space<vmem>>, vector<32x128xbf16>
    tpu.vector_store %arg8[%c0_66, %c0_67], %60 {strides = array<i32>} : memref<96x128xbf16, #tpu.memory_space<vmem>>, vector<32x128xbf16>,
    %c0_68 = arith.constant 0 : index
    %c128_69 = arith.constant 128 : index
    %62 = vector.load %arg7[%c0_68, %c128_69] : memref<32x384xbf16, #tpu.memory_space<vmem>>, vector<32x128xbf16>
    %c32_70 = arith.constant 32 : index
    %c0_71 = arith.constant 0 : index
    %63 = vector.load %arg8[%c32_70, %c0_71] : memref<96x128xbf16, #tpu.memory_space<vmem>>, vector<32x128xbf16>
    tpu.vector_store %arg8[%c32_70, %c0_71], %62 {strides = array<i32>} : memref<96x128xbf16, #tpu.memory_space<vmem>>, vector<32x128xbf16>,
    %c0_72 = arith.constant 0 : index
    %c129_73 = arith.constant 129 : index
    %64 = vector.load %arg7[%c0_72, %c129_73] : memref<32x384xbf16, #tpu.memory_space<vmem>>, vector<32x128xbf16>
    %c64_74 = arith.constant 64 : index
    %c0_75 = arith.constant 0 : index
    %65 = vector.load %arg8[%c64_74, %c0_75] : memref<96x128xbf16, #tpu.memory_space<vmem>>, vector<32x128xbf16>
    tpu.vector_store %arg8[%c64_74, %c0_75], %64 {strides = array<i32>} : memref<96x128xbf16, #tpu.memory_space<vmem>>, vector<32x128xbf16>,
    %c0_76 = arith.constant 0 : index
    %c0_77 = arith.constant 0 : index
    %66 = vector.load %arg8[%c0_76, %c0_77] : memref<96x128xbf16, #tpu.memory_space<vmem>>, vector<96x128xbf16>
    %cst_78 = arith.constant dense<0.000000e+00> : vector<32x128xf32>
    %67 = tpu.matmul %57, %66, %cst_78 {dimension_numbers = #tpu.dot_dimension_numbers<[1], [0], [0], [1], [0, 0, 1, 1], [], []>} : vector<32x96xbf16>, vector<96x128xbf16>, vector<32x128xf32> -> vector<32x128xf32>
    %68 = vector.broadcast %59 : vector<32x1xf32> to vector<32x128xf32>
    %69 = arith.addf %67, %68 : vector<32x128xf32>
    %cst_79 = arith.constant 0.000000e+00 : f32
    %70 = vector.broadcast %cst_79 : f32 to vector<32x128xf32>
    %71 = arith.maximumf %69, %70 : vector<32x128xf32>
    %c0_80 = arith.constant 0 : index
    %c0_81 = arith.constant 0 : index
    %c0_82 = arith.constant 0 : index
    %72 = vector.load %arg4[%c0_80, %c0_81, %c0_82] : memref<1x1x128xf32, #tpu.memory_space<vmem>>, vector<1x1x128xf32>
    %73 = vector.shape_cast %72 : vector<1x1x128xf32> to vector<1x128xf32>
    %74 = vector.broadcast %73 : vector<1x128xf32> to vector<32x128xf32>
    %75 = arith.mulf %71, %74 : vector<32x128xf32>
    %c0_83 = arith.constant 0 : index
    %c0_84 = arith.constant 0 : index
    %c0_85 = arith.constant 0 : index
    %76 = vector.load %arg5[%c0_83, %c0_84, %c0_85] : memref<1x32x128xf32, #tpu.memory_space<vmem>>, vector<1x32x128xf32>
    %77 = vector.shape_cast %76 : vector<1x32x128xf32> to vector<32x128xf32>
    %78 = vector.shape_cast %75 : vector<32x128xf32> to vector<1x32x128xf32>
    tpu.vector_store %arg5[%c0_83, %c0_84, %c0_85], %78 {strides = array<i32>} : memref<1x32x128xf32, #tpu.memory_space<vmem>>, vector<1x32x128xf32>,
    return
  }
  func.func @transform_0(%arg0: i32) -> (i32, i32, i32) {
    %c0_i32 = arith.constant 0 : i32
    %c0_i32_0 = arith.constant 0 : i32
    %c0_i32_1 = arith.constant 0 : i32
    return %arg0, %c0_i32, %c0_i32_0 : i32, i32, i32
  }
  func.func @transform_1(%arg0: i32) -> (i32, i32, i32) {
    %c0_i32 = arith.constant 0 : i32
    %c0_i32_0 = arith.constant 0 : i32
    %c0_i32_1 = arith.constant 0 : i32
    %c0_i32_2 = arith.constant 0 : i32
    return %c0_i32, %c0_i32_0, %c0_i32_1 : i32, i32, i32
  }
  func.func @transform_2(%arg0: i32) -> (i32, i32, i32) {
    %c0_i32 = arith.constant 0 : i32
    %c0_i32_0 = arith.constant 0 : i32
    %c0_i32_1 = arith.constant 0 : i32
    %c0_i32_2 = arith.constant 0 : i32
    return %c0_i32, %c0_i32_0, %c0_i32_1 : i32, i32, i32
  }
  func.func @transform_3(%arg0: i32) -> (i32, i32, i32) {
    %c0_i32 = arith.constant 0 : i32
    %c0_i32_0 = arith.constant 0 : i32
    %c0_i32_1 = arith.constant 0 : i32
    return %arg0, %c0_i32, %c0_i32_0 : i32, i32, i32
  }
  func.func @transform_4(%arg0: i32) -> (i32, i32, i32) {
    %c0_i32 = arith.constant 0 : i32
    %c0_i32_0 = arith.constant 0 : i32
    %c0_i32_1 = arith.constant 0 : i32
    return %arg0, %c0_i32, %c0_i32_0 : i32, i32, i32
  }
}

</mosaic_0001>

<bundles_post_ra>
// kernel: tcn_forward.1
= control target key start
LH: loop header
LB: loop body
LE: loop exit
PB: predicated region body
PF: predicated region fallthrough
CT: control target
= control target key end

     0   :  { %s645_s19 = smov 1   ;;  %s646_s24 = smov 127   ;;  %vm112_vm0 = vcmask 392192   ;;  %v647_v5 = vmov 0   ;;  %vm48_vm1 = vcmask 7168   ;;  %vm75_vm2 = vcmask 1039360   ;;  %s817_s0 = inlined_call_operand.vmem [shape: bf16[1,16,384], index: 0, kind: input, shape index: {}]   ;;  %s818_s1 = inlined_call_operand.vmem [shape: bf16[3,32,96], index: 1, kind: input, shape index: {}]   ;;  %s819_s2 = inlined_call_operand.vmem [shape: f32[3,32,1], index: 2, kind: input, shape index: {}]   ;;  %s820_s3 = inlined_call_operand.vmem [shape: f32[1,1,128], index: 3, kind: input, shape index: {}]   ;;  %s821_s4 = inlined_call_operand.vmem [shape: f32[1,32,128], index: 4, kind: output, shape index: {}]  }
   0x1   :  { %v632_v0 = vld [vmem:[%s817_s0] ss:$12 sps:$4 sm:$0xff]   ;;  %v634_v1 = vld [vmem:[%s817_s0 + $0x4] ss:$12 sps:$4 sm:$0xff]   ;;  %v637_v3 = vld [vmem:[%s817_s0 + $0x8] ss:$12 sps:$4 sm:$0xff]   ;;  %631 = vset.pattern.permute.xlu1 %v647_v5  ;;  %630 = vset.pattern.permute.xlu0 %v647_v5 }
   0x2   :  { %44 = vrot.lane.b32.xlu0 %v632_v0, %s645_s19  ;;  %v635_v2 = vld [vmem:[%s817_s0 + $0x4] ss:$12 sps:$4 sm:$0xff]   ;;  %v31_v7 = vld [vmem:[%s819_s2 + $0x8] sm:$0xff]  ;;  %v33_v8 = vld [vmem:[%s819_s2 + $0x18] sm:$0xff]  ;;  %vm281_vm3 = vcmask 785408  }
   0x3   :  { %71 = vrot.lane.b32.xlu1 %v635_v2, %s646_s24  ;;  %v639_v4 = vld [vmem:[%s818_s1] sm:$0xff]   ;;  %v32_v9 = vld [vmem:[%s819_s2 + $0x10] sm:$0xff]  ;;  %v640_v17 = vld [vmem:[%s818_s1 + $0x8] sm:$0xff]  }
   0x4   :  { %591 = vmatprep.mubr.msk.bf16.mxu0 %vm112_vm0, %v639_v4  ;;  %v30_v6 = vld [vmem:[%s819_s2] sm:$0xff]  ;;  %v544_v42 = vld [vmem:[%s819_s2 + $0x30] sm:$0xff]  ;;  %v543_v44 = vld [vmem:[%s819_s2 + $0x28] sm:$0xff] }
   0x5   :  { %v638_v13 = vld [vmem:[%s817_s0 + $0x4] ss:$12 sps:$4 sm:$0xff]   ;;  %v723_v30 = vld [vmem:[%s820_s3] ss:$0 sm:$0xff]  ;;  %v545_v45 = vld [vmem:[%s819_s2 + $0x38] sm:$0xff] }
   0x6   :  { %46 = vrot.lane.b32.xlu0 %v634_v1, %s645_s19  ;;  %v542_v41 = vld [vmem:[%s819_s2 + $0x20] sm:$0xff]  ;;  %v641_v43 = vld [vmem:[%s818_s1 + $0x10] sm:$0xff]   ;;  %v642_v58 = vld [vmem:[%s818_s1 + $0x18] sm:$0xff]  }
   0x7   :  { %73 = vrot.lane.b32.xlu1 %v637_v3, %s646_s24  ;;  %607 = vmatprep.mubr.msk.bf16.mxu1 %vm281_vm3, %v641_v43 }
   0xa   :  { %84 = vperm.xlu0 %630, %v30_v6  }
   0xb   :  { %89 = vperm.xlu1 %631, %v31_v7  }
   0xe   :  { %99 = vperm.xlu0 %630, %v33_v8  }
   0xf   :  { %94 = vperm.xlu1 %631, %v32_v9  }
  0x13   :  { %205 = vrot.lane.b32.xlu1 %v647_v5, %s645_s19 }
  0x17   :  { %209 = vrot.lane.b32.xlu1 %v647_v5, %s645_s19 }
  0x74   :  { %v45_v10 = vpop.permute.xlu0 %44 }
  0x75   :  { %v72_v11 = vpop.permute.xlu1 %71 }
  0x78   :  { %v47_v12 = vpop.permute.xlu0 %46 }
  0x79   :  { %v49_v14 = vsel %vm48_vm1, %v45_v10, %v47_v12  ;;  %v74_v15 = vpop.permute.xlu1 %73 }
  0x7a   :  { %585 = vmatprep.subr.bf16.mxu0 %v49_v14  ;;  %v76_v16 = vsel %vm75_vm2, %v72_v11, %v74_v15 }
  0x7b   :  { %586 = vmatpush3.bf16.msra.mxu0 %v49_v14 }
  0x7c   :  { %587 = vmatprep.subr.bf16.mxu0 %v638_v13 }
  0x7f   :  { %588 = vmatpush3.bf16.msra.mxu0 %v638_v13 }
  0x80   :  { %589 = vmatprep.subr.bf16.mxu0 %v76_v16 }
  0x83   :  { %590 = vmatpush3.bf16.msra.mxu0 %v76_v16 }
  0x86   :  { %592 = vmatmul.mubr.msk.bf16.vlgmr.msra.gmra.mrb[0].mxu0 %vm112_vm0, %v640_v17 }
  0x89   :  { %v85_v19 = vpop.permute.xlu0 %84 }
  0x8a   :  { %v90_v18 = vpop.permute.xlu1 %89 }
  0x8d   :  { %v100_v22 = vpop.permute.xlu0 %99 }
  0x8e   :  { %v95_v20 = vpop.permute.xlu1 %94 }
  0x92   :  { %v206_v46 = vpop.permute.xlu1 %205 }
  0x96   :  { %v210_v49 = vpop.permute.xlu1 %209 }
 0x159   :  { %v593_v21 = vpop.f32.mrb[0].mxu0 }
 0x15a   :  { %v162_v23 = vadd.f32 %v593_v21, %v95_v20  ;;  %v153_v24 = vpop.f32.mrb[1].mxu0  ;;  %v643_v20 = vld [vmem:[%s818_s1 + $0x20] sm:$0xff]   ;;  %v556_v21 = vld [vmem:[%s819_s2 + $0x48] sm:$0xff] }
 0x15b   :  { %v154_v25 = vadd.f32 %v153_v24, %v85_v19  ;;  %v594_v26 = vpop.f32.mrb[2].mxu0  ;;  %v557_v19 = vld [vmem:[%s819_s2 + $0x50] sm:$0xff]  ;;  %623 = vmatprep.mubr.msk.bf16.mxu0 %vm281_vm3, %v643_v20 }
 0x15c   :  { %v170_v27 = vmax.f32 %v162_v23, 0.0  ;;  %v165_v28 = vadd.f32 %v594_v26, %v100_v22  ;;  %v156_v29 = vpop.f32.mrb[3].mxu0  ;;  %v558_v22 = vld [vmem:[%s819_s2 + $0x58] sm:$0xff] }
 0x15d   :  { %v168_v31 = vmax.f32 %v154_v25, 0.0  ;;  %v157_v32 = vadd.f32 %v156_v29, %v90_v18  ;;  %v555_v18 = vld [vmem:[%s819_s2 + $0x40] sm:$0xff] }
 0x15e   :  { %v171_v33 = vmax.f32 %v165_v28, 0.0  ;;  %v181_v35 = vmul.f32 %v723_v30, %v170_v27 }
 0x15f   :  { %v169_v34 = vmax.f32 %v157_v32, 0.0  ;;  %v179_v37 = vmul.f32 %v723_v30, %v168_v31 }
 0x160   :  { %v182_v36 = vmul.f32 %v723_v30, %v171_v33 }
 0x161   :  { %v180_v38 = vmul.f32 %v723_v30, %v169_v34 }
 0x162   :  { %v184_v39 = vpack.c.bf16 %v182_v36, %v181_v35  ;;  %v644_v35 = vld [vmem:[%s818_s1 + $0x28] sm:$0xff]  }
 0x163   :  { %v183_v40 = vpack.c.bf16 %v180_v38, %v179_v37 }
 0x165   :  { %231 = vrot.lane.b32.xlu1 %v183_v40, %s646_s24  ;;  %207 = vrot.lane.b32.xlu0 %v183_v40, %s645_s19 }
 0x169   :  { %235 = vrot.lane.b32.xlu1 %v184_v39, %s646_s24  ;;  %211 = vrot.lane.b32.xlu0 %v184_v39, %s645_s19 }
 0x16d   :  { %253 = vperm.xlu1 %631, %v542_v41   ;;  %233 = vrot.lane.b32.xlu0 %v647_v5, %s646_s24 }
 0x171   :  { %263 = vperm.xlu1 %631, %v544_v42   ;;  %237 = vrot.lane.b32.xlu0 %v647_v5, %s646_s24 }
 0x175   :  { %258 = vperm.xlu0 %630, %v543_v44   ;;  %374 = vrot.lane.b32.xlu1 %v647_v5, %s645_s19 }
 0x179   :  { %268 = vperm.xlu0 %630, %v545_v45   ;;  %378 = vrot.lane.b32.xlu1 %v647_v5, %s645_s19 }
 0x1d7   :  { %v208_v47 = vpop.permute.xlu0 %207  ;;  %v232_v53 = vpop.permute.xlu1 %231 }
 0x1d8   :  { %v213_v48 = vsel %vm48_vm1, %v206_v46, %v208_v47 }
 0x1d9   :  { %595 = vmatprep.subr.bf16.mxu1 %v213_v48 }
 0x1da   :  { %596 = vmatpush3.bf16.msra.mxu1 %v213_v48 }
 0x1db   :  { %v212_v50 = vpop.permute.xlu0 %211  ;;  %v236_v56 = vpop.permute.xlu1 %235 }
 0x1dc   :  { %v214_v51 = vsel %vm48_vm1, %v210_v49, %v212_v50 }
 0x1dd   :  { %597 = vmatprep.subr.bf16.mxu1 %v214_v51 }
 0x1de   :  { %598 = vmatpush3.bf16.msra.mxu1 %v214_v51 }
 0x1df   :  { %599 = vmatprep.subr.bf16.mxu1 %v183_v40  ;;  %v234_v52 = vpop.permute.xlu0 %233 }
 0x1e0   :  { %v239_v54 = vsel %vm75_vm2, %v232_v53, %v234_v52 }
 0x1e2   :  { %600 = vmatpush3.bf16.msra.mxu1 %v183_v40 }
 0x1e3   :  { %601 = vmatprep.subr.bf16.mxu1 %v184_v39  ;;  %v238_v55 = vpop.permute.xlu0 %237 }
 0x1e4   :  { %v240_v57 = vsel %vm75_vm2, %v236_v56, %v238_v55 }
 0x1e6   :  { %602 = vmatpush3.bf16.msra.mxu1 %v184_v39 }
 0x1e7   :  { %603 = vmatprep.subr.bf16.mxu1 %v239_v54 }
 0x1ea   :  { %604 = vmatpush3.bf16.msra.mxu1 %v239_v54 }
 0x1eb   :  { %605 = vmatprep.subr.bf16.mxu1 %v240_v57 }
 0x1ec   :  { %v254_v59 = vpop.permute.xlu1 %253 }
 0x1ee   :  { %606 = vmatpush3.bf16.msra.mxu1 %v240_v57 }
 0x1f0   :  { %v264_v61 = vpop.permute.xlu1 %263 }
 0x1f1   :  { %608 = vmatmul.mubr.msk.bf16.vlgmr.msra.gmra.mrb[0].mxu1 %vm281_vm3, %v642_v58 }
 0x1f4   :  { %v259_v60 = vpop.permute.xlu0 %258  ;;  %v375_v23 = vpop.permute.xlu1 %374 }
 0x1f8   :  { %v269_v1 = vpop.permute.xlu0 %268  ;;  %v379_v26 = vpop.permute.xlu1 %378 }
 0x2c4   :  { %v609_v62 = vpop.f32.mrb[0].mxu1 }
 0x2c5   :  { %v331_v63 = vadd.f32 %v609_v62, %v264_v61  ;;  %v322_v0 = vpop.f32.mrb[1].mxu1 }
 0x2c6   :  { %v323_v2 = vadd.f32 %v322_v0, %v254_v59  ;;  %v610_v3 = vpop.f32.mrb[2].mxu1 }
 0x2c7   :  { %v339_v4 = vmax.f32 %v331_v63, 0.0  ;;  %v334_v6 = vadd.f32 %v610_v3, %v269_v1  ;;  %v325_v7 = vpop.f32.mrb[3].mxu1 }
 0x2c8   :  { %v337_v8 = vmax.f32 %v323_v2, 0.0  ;;  %v326_v9 = vadd.f32 %v325_v7, %v259_v60 }
 0x2c9   :  { %v340_v10 = vmax.f32 %v334_v6, 0.0  ;;  %v350_v12 = vmul.f32 %v723_v30, %v339_v4 }
 0x2ca   :  { %v338_v11 = vmax.f32 %v326_v9, 0.0  ;;  %v348_v14 = vmul.f32 %v723_v30, %v337_v8 }
 0x2cb   :  { %v351_v13 = vmul.f32 %v723_v30, %v340_v10 }
 0x2cc   :  { %v349_v15 = vmul.f32 %v723_v30, %v338_v11 }
 0x2cd   :  { %v353_v16 = vpack.c.bf16 %v351_v13, %v350_v12 }
 0x2ce   :  { %v352_v17 = vpack.c.bf16 %v349_v15, %v348_v14 }
 0x2d0   :  { %400 = vrot.lane.b32.xlu1 %v352_v17, %s646_s24  ;;  %376 = vrot.lane.b32.xlu0 %v352_v17, %s645_s19 }
 0x2d4   :  { %404 = vrot.lane.b32.xlu1 %v353_v16, %s646_s24  ;;  %380 = vrot.lane.b32.xlu0 %v353_v16, %s645_s19 }
 0x2d8   :  { %422 = vperm.xlu1 %631, %v555_v18   ;;  %402 = vrot.lane.b32.xlu0 %v647_v5, %s646_s24 }
 0x2dc   :  { %432 = vperm.xlu1 %631, %v557_v19   ;;  %406 = vrot.lane.b32.xlu0 %v647_v5, %s646_s24 }
 0x2e0   :  { %427 = vperm.xlu0 %630, %v556_v21  }
 0x2e4   :  { %437 = vperm.xlu0 %630, %v558_v22  }
 0x342   :  { %v377_v24 = vpop.permute.xlu0 %376  ;;  %v401_v29 = vpop.permute.xlu1 %400 }
 0x343   :  { %v382_v25 = vsel %vm48_vm1, %v375_v23, %v377_v24 }
 0x344   :  { %611 = vmatprep.subr.bf16.mxu0 %v382_v25 }
 0x345   :  { %612 = vmatpush3.bf16.msra.mxu0 %v382_v25 }
 0x346   :  { %v381_v27 = vpop.permute.xlu0 %380  ;;  %v405_v33 = vpop.permute.xlu1 %404 }
 0x347   :  { %v383_v5 = vsel %vm48_vm1, %v379_v26, %v381_v27 }
 0x348   :  { %613 = vmatprep.subr.bf16.mxu0 %v383_v5 }
 0x349   :  { %614 = vmatpush3.bf16.msra.mxu0 %v383_v5 }
 0x34a   :  { %615 = vmatprep.subr.bf16.mxu0 %v352_v17  ;;  %v403_v28 = vpop.permute.xlu0 %402 }
 0x34b   :  { %v408_v31 = vsel %vm75_vm2, %v401_v29, %v403_v28 }
 0x34d   :  { %616 = vmatpush3.bf16.msra.mxu0 %v352_v17 }
 0x34e   :  { %617 = vmatprep.subr.bf16.mxu0 %v353_v16  ;;  %v407_v32 = vpop.permute.xlu0 %406 }
 0x34f   :  { %v409_v34 = vsel %vm75_vm2, %v405_v33, %v407_v32 }
 0x351   :  { %618 = vmatpush3.bf16.msra.mxu0 %v353_v16 }
 0x352   :  { %619 = vmatprep.subr.bf16.mxu0 %v408_v31 }
 0x355   :  { %620 = vmatpush3.bf16.msra.mxu0 %v408_v31 }
 0x356   :  { %621 = vmatprep.subr.bf16.mxu0 %v409_v34 }
 0x357   :  { %v423_v36 = vpop.permute.xlu1 %422 }
 0x359   :  { %622 = vmatpush3.bf16.msra.mxu0 %v409_v34 }
 0x35b   :  { %v433_v38 = vpop.permute.xlu1 %432 }
 0x35c   :  { %624 = vmatmul.mubr.msk.bf16.vlgmr.msra.gmra.mrb[4].mxu0 %vm281_vm3, %v644_v35 }
 0x35f   :  { %v428_v37 = vpop.permute.xlu0 %427 }
 0x363   :  { %v438_v42 = vpop.permute.xlu0 %437 }
 0x42f   :  { %v625_v39 = vpop.f32.mrb[4].mxu0 }
 0x430   :  { %v499_v40 = vadd.f32 %v625_v39, %v433_v38  ;;  %v490_v41 = vpop.f32.mrb[5].mxu0 }
 0x431   :  { %v491_v43 = vadd.f32 %v490_v41, %v423_v36  ;;  %v626_v44 = vpop.f32.mrb[6].mxu0 }
 0x432   :  { %v507_v45 = vmax.f32 %v499_v40, 0.0  ;;  %v502_v46 = vadd.f32 %v626_v44, %v438_v42  ;;  %v493_v47 = vpop.f32.mrb[7].mxu0 }
 0x433   :  { %v505_v48 = vmax.f32 %v491_v43, 0.0  ;;  %v494_v49 = vadd.f32 %v493_v47, %v428_v37 }
 0x434   :  { %v518_v50 = vmul.f32 %v723_v30, %v507_v45  ;;  %v508_v51 = vmax.f32 %v502_v46, 0.0 }
 0x435   :  { %v516_v52 = vmul.f32 %v723_v30, %v505_v48  ;;  %v506_v53 = vmax.f32 %v494_v49, 0.0 }
 0x436   :  { %522 = vst [vmem:[%s821_s4 + $0x10] sm:$0xff] %v518_v50  ;;  %v519_v54 = vmul.f32 %v723_v30, %v508_v51 }
 0x437   :  { %520 = vst [vmem:[%s821_s4] sm:$0xff] %v516_v52  ;;  %v517_v55 = vmul.f32 %v723_v30, %v506_v53 }
 0x438   :  { %523 = vst [vmem:[%s821_s4 + $0x18] sm:$0xff] %v519_v54 }
 0x439   :  { %521 = vst [vmem:[%s821_s4 + $0x8] sm:$0xff] %v517_v55 }

</bundles_post_ra>
